<compile_context>
chip_gen: v5e
topology: v5e:2x2
jax: 0.10.0
libtpu: 0.0.40
codegen_flags: <defaults>
</compile_context>

<pallas_src>
import math
import functools

import jax
import jax.numpy as jnp
from jax.experimental import pallas as pl
from jax.experimental.pallas import tpu as pltpu

_LANE = 128     # lane width (last dim granularity)
_SUBLANE = 8    # sublane width (second-to-last dim granularity, f32)


def _round_up(x, m):
    return ((x + m - 1) // m) * m


def _gelu_tanh(x):
    # Matches the reference gelu(): 0.5*x*(1+tanh(sqrt(2/pi)*(x+0.044715*x^3)))
    c = math.sqrt(2.0 / math.pi)
    return 0.5 * x * (1.0 + jnp.tanh(c * (x + 0.044715 * x * x * x)))


def _mlp_fused_kernel(*refs, num_linear, dims_p, tm, compute_dtype):
    """refs = (x, w0, b0, ..., w{L-1}, b{L-1}, out, h_scratch).

    Computes the whole MLP forward for one batch tile; intermediates stay
    on-chip (staged through VMEM scratch).  Zero padding is exact: padded K
    columns hit zero weight rows, padded N columns get bias 0 and gelu(0)=0.
    """
    x_ref = refs[0]
    o_ref = refs[1 + 2 * num_linear]
    h_ref = refs[2 + 2 * num_linear]       # VMEM scratch (tm_s, max_dim)
    wb = refs[1:1 + 2 * num_linear]

    h = x_ref[...].astype(compute_dtype)
    for i in range(num_linear):
        w = wb[2 * i][...]                 # already in compute_dtype (pre-cast)
        b = wb[2 * i + 1][...]             # f32
        acc = jnp.dot(h, w, preferred_element_type=jnp.float32) + b
        if i < num_linear - 1:
            acc = _gelu_tanh(acc)          # f32 epilogue (tanh -> EUP slot)
            n = dims_p[i + 1]
            # Stage activation through explicit VMEM scratch (deterministic
            # footprint; compiler does not have to spill the held value).
            h_ref[:tm, :n] = acc.astype(compute_dtype)
            h = h_ref[:tm, :n]
        else:
            o_ref[...] = acc.astype(o_ref.dtype)


def _vmem_cap_bytes():
    """Generation-aware VMEM cap (~85% of physical for Mosaic headroom)."""
    try:
        cap = int(pltpu.get_tpu_info().vmem_capacity_bytes)
    except Exception:
        cap = 64 * 1024 * 1024             # conservative (v7x per-TC)
    return int(cap * 0.85)


def _make_mlp_call(dims_p, TM, M_pad, num_linear, compute_dtype,
                   single_buffer_weights):
    maxd = max(dims_p)
    w_bytes = jnp.dtype(compute_dtype).itemsize
    tm_s = _round_up(TM, 16 if w_bytes == 2 else _SUBLANE)  # scratch sublane pad

    w_kwargs = {}
    if single_buffer_weights:
        # Weights/biases are grid-invariant -> single buffer instead of the
        # default double-buffering (halves resident weight VMEM).
        w_kwargs = dict(pipeline_mode=pl.Buffered(1))

    in_specs = [pl.BlockSpec((TM, dims_p[0]), lambda i: (i, 0))]
    for li in range(num_linear):
        kp, np_ = dims_p[li], dims_p[li + 1]
        in_specs.append(pl.BlockSpec((kp, np_), lambda i: (0, 0), **w_kwargs))
        in_specs.append(pl.BlockSpec((1, np_), lambda i: (0, 0), **w_kwargs))
    out_spec = pl.BlockSpec((TM, dims_p[-1]), lambda i: (i, 0))

    # VMEM budget: double-buffered f32 batch tiles in/out + (single- or
    # double-buffered) weights in compute dtype + f32 biases + activation
    # scratch + headroom for live f32 accumulator/epilogue values.
    wb_bufs = 1 if single_buffer_weights else 2
    est = 2 * 4 * TM * (dims_p[0] + dims_p[-1])
    for li in range(num_linear):
        est += wb_bufs * (w_bytes * dims_p[li] * dims_p[li + 1]
                          + 4 * dims_p[li + 1])
    est += w_bytes * tm_s * maxd            # explicit activation scratch
    est += 3 * 4 * TM * maxd                # live f32 values headroom
    vmem_limit = int(min(_vmem_cap_bytes(), max(est + (2 << 20), 8 << 20)))
    # TODO(synk): layers whose padded weights exceed the VMEM budget need a
    # K/N-tiled streamed path (emit_pipeline over weight slabs); not implemented.

    kernel = functools.partial(
        _mlp_fused_kernel, num_linear=num_linear, dims_p=tuple(dims_p),
        tm=TM, compute_dtype=compute_dtype)

    return pl.pallas_call(
        kernel,
        out_shape=jax.ShapeDtypeStruct((M_pad, dims_p[-1]), jnp.float32),
        grid_spec=pltpu.PrefetchScalarGridSpec(
            num_scalar_prefetch=0,
            grid=(M_pad // TM,),
            in_specs=in_specs,
            out_specs=out_spec,
            scratch_shapes=[pltpu.VMEM((tm_s, maxd), compute_dtype)],
        ),
        compiler_params=pltpu.CompilerParams(
            dimension_semantics=("parallel",),
            vmem_limit_bytes=vmem_limit,
        ),
    )


def mlp_forward(params, x, *, use_bf16=True):
    """Fused MLP forward.

    params: list of (w, b) with w: [n_in, n_out] (pre-transposed PyTorch
            weight), b: [1, n_out].  x: [M, input_size] float32.
    use_bf16: bf16 MXU operands with f32 accumulation (performance default);
              set False for the bit-tight f32 path.
    Returns [M, output_size] float32.
    """
    M, K0 = x.shape
    num_linear = len(params)
    out_features = params[-1][0].shape[1]
    compute_dtype = jnp.bfloat16 if use_bf16 else jnp.float32

    # Feature dims of every activation in the chain, padded to the lane width.
    dims = [K0] + [w.shape[1] for w, _ in params]
    dims_p = [_round_up(d, _LANE) for d in dims]

    # Batch tiling: up to 256 rows (fills 256-wide MXU on v6e/v7x); keep >= 2
    # tiles for medium batches so both v7x TensorCores get work.
    M8 = _round_up(M, _SUBLANE)
    if M8 <= 128:
        TM = M8
    elif M8 <= 512:
        TM = _round_up((M8 + 1) // 2, _SUBLANE)
    else:
        TM = 256
    M_pad = _round_up(M, TM)

    # Zero-pad input / weights / biases (exact: padded K cols hit zero weight
    # rows, padded N cols get bias 0 and gelu(0)=0, sliced off at the end).
    # Weights are pre-cast to the MXU operand dtype OUTSIDE the kernel.
    x_p = jnp.zeros((M_pad, dims_p[0]), jnp.float32).at[:M, :K0].set(x)
    flat_args = [x_p]
    for li, (w, b) in enumerate(params):
        kp, np_ = dims_p[li], dims_p[li + 1]
        w_p = (jnp.zeros((kp, np_), jnp.float32)
               .at[: w.shape[0], : w.shape[1]].set(w)).astype(compute_dtype)
        b_p = jnp.zeros((1, np_), jnp.float32).at[:, : b.shape[1]].set(b)
        flat_args += [w_p, b_p]

    try:
        call = _make_mlp_call(dims_p, TM, M_pad, num_linear, compute_dtype,
                              single_buffer_weights=True)
        out_p = jax.block_until_ready(call(*flat_args))
    except Exception:
        # Fallback: default (double-buffered) weight specs.
        call = _make_mlp_call(dims_p, TM, M_pad, num_linear, compute_dtype,
                              single_buffer_weights=False)
        out_p = call(*flat_args)

    return out_p[:M, :out_features]


def init_mlp_params(key, input_size, hidden_size, output_size, num_layers):
    """Deterministic init mirroring nn.Linear default (uniform(-1/sqrt(fan_in), ...))."""
    params = []
    for i in range(num_layers + 1):
        n_in = input_size if i == 0 else hidden_size
        n_out = hidden_size if i < num_layers else output_size
        key, kw, kb = jax.random.split(key, 3)
        bound = 1.0 / math.sqrt(n_in)
        # Stored as [n_in, n_out] (pre-transposed PyTorch weight).
        w = jax.random.uniform(kw, (n_in, n_out), jnp.float32, -bound, bound)
        b = jax.random.uniform(kb, (1, n_out), jnp.float32, -bound, bound)
        params.append((w, b))
    return params


def mlp_forward_ref(params, x):
    """Pure-JAX reference: Linear -> (Dropout=id) -> GELU, Linear last."""
    # TODO(synk): training-mode Dropout not implemented (eval-mode identity used).
    num_layers = len(params) - 1
    h = x
    for i, (w, b) in enumerate(params):
        h = jnp.dot(h, w, preferred_element_type=jnp.float32) + b
        if i < num_layers:
            h = _gelu_tanh(h)
    return h


if __name__ == "__main__":
    input_size, hidden_size, output_size, num_layers = 32, 64, 16, 2
    batch = 8

    key = jax.random.PRNGKey(0)
    key, kx = jax.random.split(key)
    x = jax.random.normal(kx, (batch, input_size), jnp.float32)

    params = init_mlp_params(key, input_size, hidden_size, output_size, num_layers)
    ref = mlp_forward_ref(params, x)

    # Strict-accuracy path (f32 MXU operands): must match the reference tightly.
    out_f32 = jax.block_until_ready(mlp_forward(params, x, use_bf16=False))
    assert out_f32.shape == (batch, output_size)
    assert jnp.allclose(out_f32, ref, atol=1e-5, rtol=1e-5)

    # Performance-default path (bf16 MXU operands, f32 accumulation): looser tol.
    out_bf16 = jax.block_until_ready(mlp_forward(params, x))
    assert out_bf16.shape == (batch, output_size)
    assert jnp.allclose(out_bf16, ref, atol=3e-2, rtol=3e-2)

    print("KERNEL_OK")
</pallas_src>

<mosaic_0001>
module attributes {stable_mosaic.version = 11 : i64} {
  func.func @_mlp_fused_kernel(%arg0: i32, %arg1: memref<8x128xf32, #tpu.memory_space<vmem>>, %arg2: memref<128x128xf32, #tpu.memory_space<vmem>>, %arg3: memref<1x128xf32, #tpu.memory_space<vmem>>, %arg4: memref<128x128xf32, #tpu.memory_space<vmem>>, %arg5: memref<1x128xf32, #tpu.memory_space<vmem>>, %arg6: memref<128x128xf32, #tpu.memory_space<vmem>>, %arg7: memref<1x128xf32, #tpu.memory_space<vmem>>, %arg8: memref<8x128xf32, #tpu.memory_space<vmem>>, %arg9: memref<8x128xf32, #tpu.memory_space<vmem>>) attributes {dimension_semantics = [#tpu.dimension_semantics<parallel>], iteration_bounds = array<i64: 1>, scalar_prefetch = 0 : i64, scratch_operands = 1 : i64, tpu.core_type = #tpu.core_type<tc>, window_params = [{transform_indices = @transform_0, window_bounds = array<i64: 8, 128>}, {pipeline_mode = #tpu.pipeline_mode<synchronous>, transform_indices = @transform_1, window_bounds = array<i64: 128, 128>}, {pipeline_mode = #tpu.pipeline_mode<synchronous>, transform_indices = @transform_2, window_bounds = array<i64: 1, 128>}, {pipeline_mode = #tpu.pipeline_mode<synchronous>, transform_indices = @transform_3, window_bounds = array<i64: 128, 128>}, {pipeline_mode = #tpu.pipeline_mode<synchronous>, transform_indices = @transform_4, window_bounds = array<i64: 1, 128>}, {pipeline_mode = #tpu.pipeline_mode<synchronous>, transform_indices = @transform_5, window_bounds = array<i64: 128, 128>}, {pipeline_mode = #tpu.pipeline_mode<synchronous>, transform_indices = @transform_6, window_bounds = array<i64: 1, 128>}, {transform_indices = @transform_7, window_bounds = array<i64: 8, 128>}]} {
    %c0 = arith.constant 0 : index
    %c0_0 = arith.constant 0 : index
    %0 = vector.load %arg1[%c0, %c0_0] : memref<8x128xf32, #tpu.memory_space<vmem>>, vector<8x128xf32>
    %c0_1 = arith.constant 0 : index
    %c0_2 = arith.constant 0 : index
    %1 = vector.load %arg2[%c0_1, %c0_2] : memref<128x128xf32, #tpu.memory_space<vmem>>, vector<128x128xf32>
    %c0_3 = arith.constant 0 : index
    %c0_4 = arith.constant 0 : index
    %2 = vector.load %arg3[%c0_3, %c0_4] : memref<1x128xf32, #tpu.memory_space<vmem>>, vector<1x128xf32>
    %cst = arith.constant dense<0.000000e+00> : vector<8x128xf32>
    %3 = tpu.matmul %0, %1, %cst {dimension_numbers = #tpu.dot_dimension_numbers<[1], [0], [0], [1], [0, 0, 1, 1], [], []>} : vector<8x128xf32>, vector<128x128xf32>, vector<8x128xf32> -> vector<8x128xf32>
    %4 = vector.broadcast %2 : vector<1x128xf32> to vector<8x128xf32>
    %5 = arith.addf %3, %4 : vector<8x128xf32>
    %cst_5 = arith.constant 5.000000e-01 : f32
    %6 = vector.broadcast %cst_5 : f32 to vector<8x128xf32>
    %7 = arith.mulf %6, %5 : vector<8x128xf32>
    %cst_6 = arith.constant 4.471500e-02 : f32
    %8 = vector.broadcast %cst_6 : f32 to vector<8x128xf32>
    %9 = arith.mulf %8, %5 : vector<8x128xf32>
    %10 = arith.mulf %9, %5 : vector<8x128xf32>
    %11 = arith.mulf %10, %5 : vector<8x128xf32>
    %12 = arith.addf %5, %11 : vector<8x128xf32>
    %cst_7 = arith.constant 0.797884583 : f32
    %13 = vector.broadcast %cst_7 : f32 to vector<8x128xf32>
    %14 = arith.mulf %13, %12 : vector<8x128xf32>
    %15 = math.tanh %14 : vector<8x128xf32>
    %cst_8 = arith.constant 1.000000e+00 : f32
    %16 = vector.broadcast %cst_8 : f32 to vector<8x128xf32>
    %17 = arith.addf %16, %15 : vector<8x128xf32>
    %18 = arith.mulf %7, %17 : vector<8x128xf32>
    %c0_9 = arith.constant 0 : index
    %c0_10 = arith.constant 0 : index
    %19 = vector.load %arg9[%c0_9, %c0_10] : memref<8x128xf32, #tpu.memory_space<vmem>>, vector<8x128xf32>
    tpu.vector_store %arg9[%c0_9, %c0_10], %18 {strides = array<i32>} : memref<8x128xf32, #tpu.memory_space<vmem>>, vector<8x128xf32>,
    %c0_11 = arith.constant 0 : index
    %c0_12 = arith.constant 0 : index
    %20 = vector.load %arg9[%c0_11, %c0_12] : memref<8x128xf32, #tpu.memory_space<vmem>>, vector<8x128xf32>
    %c0_13 = arith.constant 0 : index
    %c0_14 = arith.constant 0 : index
    %21 = vector.load %arg4[%c0_13, %c0_14] : memref<128x128xf32, #tpu.memory_space<vmem>>, vector<128x128xf32>
    %c0_15 = arith.constant 0 : index
    %c0_16 = arith.constant 0 : index
    %22 = vector.load %arg5[%c0_15, %c0_16] : memref<1x128xf32, #tpu.memory_space<vmem>>, vector<1x128xf32>
    %cst_17 = arith.constant dense<0.000000e+00> : vector<8x128xf32>
    %23 = tpu.matmul %20, %21, %cst_17 {dimension_numbers = #tpu.dot_dimension_numbers<[1], [0], [0], [1], [0, 0, 1, 1], [], []>} : vector<8x128xf32>, vector<128x128xf32>, vector<8x128xf32> -> vector<8x128xf32>
    %24 = vector.broadcast %22 : vector<1x128xf32> to vector<8x128xf32>
    %25 = arith.addf %23, %24 : vector<8x128xf32>
    %cst_18 = arith.constant 5.000000e-01 : f32
    %26 = vector.broadcast %cst_18 : f32 to vector<8x128xf32>
    %27 = arith.mulf %26, %25 : vector<8x128xf32>
    %cst_19 = arith.constant 4.471500e-02 : f32
    %28 = vector.broadcast %cst_19 : f32 to vector<8x128xf32>
    %29 = arith.mulf %28, %25 : vector<8x128xf32>
    %30 = arith.mulf %29, %25 : vector<8x128xf32>
    %31 = arith.mulf %30, %25 : vector<8x128xf32>
    %32 = arith.addf %25, %31 : vector<8x128xf32>
    %cst_20 = arith.constant 0.797884583 : f32
    %33 = vector.broadcast %cst_20 : f32 to vector<8x128xf32>
    %34 = arith.mulf %33, %32 : vector<8x128xf32>
    %35 = math.tanh %34 : vector<8x128xf32>
    %cst_21 = arith.constant 1.000000e+00 : f32
    %36 = vector.broadcast %cst_21 : f32 to vector<8x128xf32>
    %37 = arith.addf %36, %35 : vector<8x128xf32>
    %38 = arith.mulf %27, %37 : vector<8x128xf32>
    %c0_22 = arith.constant 0 : index
    %c0_23 = arith.constant 0 : index
    %39 = vector.load %arg9[%c0_22, %c0_23] : memref<8x128xf32, #tpu.memory_space<vmem>>, vector<8x128xf32>
    tpu.vector_store %arg9[%c0_22, %c0_23], %38 {strides = array<i32>} : memref<8x128xf32, #tpu.memory_space<vmem>>, vector<8x128xf32>,
    %c0_24 = arith.constant 0 : index
    %c0_25 = arith.constant 0 : index
    %40 = vector.load %arg9[%c0_24, %c0_25] : memref<8x128xf32, #tpu.memory_space<vmem>>, vector<8x128xf32>
    %c0_26 = arith.constant 0 : index
    %c0_27 = arith.constant 0 : index
    %41 = vector.load %arg6[%c0_26, %c0_27] : memref<128x128xf32, #tpu.memory_space<vmem>>, vector<128x128xf32>
    %c0_28 = arith.constant 0 : index
    %c0_29 = arith.constant 0 : index
    %42 = vector.load %arg7[%c0_28, %c0_29] : memref<1x128xf32, #tpu.memory_space<vmem>>, vector<1x128xf32>
    %cst_30 = arith.constant dense<0.000000e+00> : vector<8x128xf32>
    %43 = tpu.matmul %40, %41, %cst_30 {dimension_numbers = #tpu.dot_dimension_numbers<[1], [0], [0], [1], [0, 0, 1, 1], [], []>} : vector<8x128xf32>, vector<128x128xf32>, vector<8x128xf32> -> vector<8x128xf32>
    %44 = vector.broadcast %42 : vector<1x128xf32> to vector<8x128xf32>
    %45 = arith.addf %43, %44 : vector<8x128xf32>
    %c0_31 = arith.constant 0 : index
    %c0_32 = arith.constant 0 : index
    %46 = vector.load %arg8[%c0_31, %c0_32] : memref<8x128xf32, #tpu.memory_space<vmem>>, vector<8x128xf32>
    tpu.vector_store %arg8[%c0_31, %c0_32], %45 {strides = array<i32>} : memref<8x128xf32, #tpu.memory_space<vmem>>, vector<8x128xf32>,
    return
  }
  func.func @transform_0(%arg0: i32) -> (i32, i32) {
    %c0_i32 = arith.constant 0 : i32
    %c0_i32_0 = arith.constant 0 : i32
    return %arg0, %c0_i32 : i32, i32
  }
  func.func @transform_1(%arg0: i32) -> (i32, i32) {
    %c0_i32 = arith.constant 0 : i32
    %c0_i32_0 = arith.constant 0 : i32
    %c0_i32_1 = arith.constant 0 : i32
    return %c0_i32, %c0_i32_0 : i32, i32
  }
  func.func @transform_2(%arg0: i32) -> (i32, i32) {
    %c0_i32 = arith.constant 0 : i32
    %c0_i32_0 = arith.constant 0 : i32
    %c0_i32_1 = arith.constant 0 : i32
    return %c0_i32, %c0_i32_0 : i32, i32
  }
  func.func @transform_3(%arg0: i32) -> (i32, i32) {
    %c0_i32 = arith.constant 0 : i32
    %c0_i32_0 = arith.constant 0 : i32
    %c0_i32_1 = arith.constant 0 : i32
    return %c0_i32, %c0_i32_0 : i32, i32
  }
  func.func @transform_4(%arg0: i32) -> (i32, i32) {
    %c0_i32 = arith.constant 0 : i32
    %c0_i32_0 = arith.constant 0 : i32
    %c0_i32_1 = arith.constant 0 : i32
    return %c0_i32, %c0_i32_0 : i32, i32
  }
  func.func @transform_5(%arg0: i32) -> (i32, i32) {
    %c0_i32 = arith.constant 0 : i32
    %c0_i32_0 = arith.constant 0 : i32
    %c0_i32_1 = arith.constant 0 : i32
    return %c0_i32, %c0_i32_0 : i32, i32
  }
  func.func @transform_6(%arg0: i32) -> (i32, i32) {
    %c0_i32 = arith.constant 0 : i32
    %c0_i32_0 = arith.constant 0 : i32
    %c0_i32_1 = arith.constant 0 : i32
    return %c0_i32, %c0_i32_0 : i32, i32
  }
  func.func @transform_7(%arg0: i32) -> (i32, i32) {
    %c0_i32 = arith.constant 0 : i32
    %c0_i32_0 = arith.constant 0 : i32
    return %arg0, %c0_i32 : i32, i32
  }
}

module attributes {stable_mosaic.version = 11 : i64} {
  func.func @_mlp_fused_kernel(%arg0: i32, %arg1: memref<8x128xf32, #tpu.memory_space<vmem>>, %arg2: memref<128x128xf32, #tpu.memory_space<vmem>>, %arg3: memref<1x128xf32, #tpu.memory_space<vmem>>, %arg4: memref<128x128xf32, #tpu.memory_space<vmem>>, %arg5: memref<1x128xf32, #tpu.memory_space<vmem>>, %arg6: memref<128x128xf32, #tpu.memory_space<vmem>>, %arg7: memref<1x128xf32, #tpu.memory_space<vmem>>, %arg8: memref<8x128xf32, #tpu.memory_space<vmem>>, %arg9: memref<8x128xf32, #tpu.memory_space<vmem>>) attributes {dimension_semantics = [#tpu.dimension_semantics<parallel>], iteration_bounds = array<i64: 1>, scalar_prefetch = 0 : i64, scratch_operands = 1 : i64, tpu.core_type = #tpu.core_type<tc>, window_params = [{transform_indices = @transform_0, window_bounds = array<i64: 8, 128>}, {pipeline_mode = #tpu.pipeline_mode<synchronous>, transform_indices = @transform_1, window_bounds = array<i64: 128, 128>}, {pipeline_mode = #tpu.pipeline_mode<synchronous>, transform_indices = @transform_2, window_bounds = array<i64: 1, 128>}, {pipeline_mode = #tpu.pipeline_mode<synchronous>, transform_indices = @transform_3, window_bounds = array<i64: 128, 128>}, {pipeline_mode = #tpu.pipeline_mode<synchronous>, transform_indices = @transform_4, window_bounds = array<i64: 1, 128>}, {pipeline_mode = #tpu.pipeline_mode<synchronous>, transform_indices = @transform_5, window_bounds = array<i64: 128, 128>}, {pipeline_mode = #tpu.pipeline_mode<synchronous>, transform_indices = @transform_6, window_bounds = array<i64: 1, 128>}, {transform_indices = @transform_7, window_bounds = array<i64: 8, 128>}]} {
    %c0 = arith.constant 0 : index
    %c0_0 = arith.constant 0 : index
    %0 = vector.load %arg1[%c0, %c0_0] : memref<8x128xf32, #tpu.memory_space<vmem>>, vector<8x128xf32>
    %c0_1 = arith.constant 0 : index
    %c0_2 = arith.constant 0 : index
    %1 = vector.load %arg2[%c0_1, %c0_2] : memref<128x128xf32, #tpu.memory_space<vmem>>, vector<128x128xf32>
    %c0_3 = arith.constant 0 : index
    %c0_4 = arith.constant 0 : index
    %2 = vector.load %arg3[%c0_3, %c0_4] : memref<1x128xf32, #tpu.memory_space<vmem>>, vector<1x128xf32>
    %cst = arith.constant dense<0.000000e+00> : vector<8x128xf32>
    %3 = tpu.matmul %0, %1, %cst {dimension_numbers = #tpu.dot_dimension_numbers<[1], [0], [0], [1], [0, 0, 1, 1], [], []>} : vector<8x128xf32>, vector<128x128xf32>, vector<8x128xf32> -> vector<8x128xf32>
    %4 = vector.broadcast %2 : vector<1x128xf32> to vector<8x128xf32>
    %5 = arith.addf %3, %4 : vector<8x128xf32>
    %cst_5 = arith.constant 5.000000e-01 : f32
    %6 = vector.broadcast %cst_5 : f32 to vector<8x128xf32>
    %7 = arith.mulf %6, %5 : vector<8x128xf32>
    %cst_6 = arith.constant 4.471500e-02 : f32
    %8 = vector.broadcast %cst_6 : f32 to vector<8x128xf32>
    %9 = arith.mulf %8, %5 : vector<8x128xf32>
    %10 = arith.mulf %9, %5 : vector<8x128xf32>
    %11 = arith.mulf %10, %5 : vector<8x128xf32>
    %12 = arith.addf %5, %11 : vector<8x128xf32>
    %cst_7 = arith.constant 0.797884583 : f32
    %13 = vector.broadcast %cst_7 : f32 to vector<8x128xf32>
    %14 = arith.mulf %13, %12 : vector<8x128xf32>
    %15 = math.tanh %14 : vector<8x128xf32>
    %cst_8 = arith.constant 1.000000e+00 : f32
    %16 = vector.broadcast %cst_8 : f32 to vector<8x128xf32>
    %17 = arith.addf %16, %15 : vector<8x128xf32>
    %18 = arith.mulf %7, %17 : vector<8x128xf32>
    %c0_9 = arith.constant 0 : index
    %c0_10 = arith.constant 0 : index
    %19 = vector.load %arg9[%c0_9, %c0_10] : memref<8x128xf32, #tpu.memory_space<vmem>>, vector<8x128xf32>
    tpu.vector_store %arg9[%c0_9, %c0_10], %18 {strides = array<i32>} : memref<8x128xf32, #tpu.memory_space<vmem>>, vector<8x128xf32>,
    %c0_11 = arith.constant 0 : index
    %c0_12 = arith.constant 0 : index
    %20 = vector.load %arg9[%c0_11, %c0_12] : memref<8x128xf32, #tpu.memory_space<vmem>>, vector<8x128xf32>
    %c0_13 = arith.constant 0 : index
    %c0_14 = arith.constant 0 : index
    %21 = vector.load %arg4[%c0_13, %c0_14] : memref<128x128xf32, #tpu.memory_space<vmem>>, vector<128x128xf32>
    %c0_15 = arith.constant 0 : index
    %c0_16 = arith.constant 0 : index
    %22 = vector.load %arg5[%c0_15, %c0_16] : memref<1x128xf32, #tpu.memory_space<vmem>>, vector<1x128xf32>
    %cst_17 = arith.constant dense<0.000000e+00> : vector<8x128xf32>
    %23 = tpu.matmul %20, %21, %cst_17 {dimension_numbers = #tpu.dot_dimension_numbers<[1], [0], [0], [1], [0, 0, 1, 1], [], []>} : vector<8x128xf32>, vector<128x128xf32>, vector<8x128xf32> -> vector<8x128xf32>
    %24 = vector.broadcast %22 : vector<1x128xf32> to vector<8x128xf32>
    %25 = arith.addf %23, %24 : vector<8x128xf32>
    %cst_18 = arith.constant 5.000000e-01 : f32
    %26 = vector.broadcast %cst_18 : f32 to vector<8x128xf32>
    %27 = arith.mulf %26, %25 : vector<8x128xf32>
    %cst_19 = arith.constant 4.471500e-02 : f32
    %28 = vector.broadcast %cst_19 : f32 to vector<8x128xf32>
    %29 = arith.mulf %28, %25 : vector<8x128xf32>
    %30 = arith.mulf %29, %25 : vector<8x128xf32>
    %31 = arith.mulf %30, %25 : vector<8x128xf32>
    %32 = arith.addf %25, %31 : vector<8x128xf32>
    %cst_20 = arith.constant 0.797884583 : f32
    %33 = vector.broadcast %cst_20 : f32 to vector<8x128xf32>
    %34 = arith.mulf %33, %32 : vector<8x128xf32>
    %35 = math.tanh %34 : vector<8x128xf32>
    %cst_21 = arith.constant 1.000000e+00 : f32
    %36 = vector.broadcast %cst_21 : f32 to vector<8x128xf32>
    %37 = arith.addf %36, %35 : vector<8x128xf32>
    %38 = arith.mulf %27, %37 : vector<8x128xf32>
    %c0_22 = arith.constant 0 : index
    %c0_23 = arith.constant 0 : index
    %39 = vector.load %arg9[%c0_22, %c0_23] : memref<8x128xf32, #tpu.memory_space<vmem>>, vector<8x128xf32>
    tpu.vector_store %arg9[%c0_22, %c0_23], %38 {strides = array<i32>} : memref<8x128xf32, #tpu.memory_space<vmem>>, vector<8x128xf32>,
    %c0_24 = arith.constant 0 : index
    %c0_25 = arith.constant 0 : index
    %40 = vector.load %arg9[%c0_24, %c0_25] : memref<8x128xf32, #tpu.memory_space<vmem>>, vector<8x128xf32>
    %c0_26 = arith.constant 0 : index
    %c0_27 = arith.constant 0 : index
    %41 = vector.load %arg6[%c0_26, %c0_27] : memref<128x128xf32, #tpu.memory_space<vmem>>, vector<128x128xf32>
    %c0_28 = arith.constant 0 : index
    %c0_29 = arith.constant 0 : index
    %42 = vector.load %arg7[%c0_28, %c0_29] : memref<1x128xf32, #tpu.memory_space<vmem>>, vector<1x128xf32>
    %cst_30 = arith.constant dense<0.000000e+00> : vector<8x128xf32>
    %43 = tpu.matmul %40, %41, %cst_30 {dimension_numbers = #tpu.dot_dimension_numbers<[1], [0], [0], [1], [0, 0, 1, 1], [], []>} : vector<8x128xf32>, vector<128x128xf32>, vector<8x128xf32> -> vector<8x128xf32>
    %44 = vector.broadcast %42 : vector<1x128xf32> to vector<8x128xf32>
    %45 = arith.addf %43, %44 : vector<8x128xf32>
    %c0_31 = arith.constant 0 : index
    %c0_32 = arith.constant 0 : index
    %46 = vector.load %arg8[%c0_31, %c0_32] : memref<8x128xf32, #tpu.memory_space<vmem>>, vector<8x128xf32>
    tpu.vector_store %arg8[%c0_31, %c0_32], %45 {strides = array<i32>} : memref<8x128xf32, #tpu.memory_space<vmem>>, vector<8x128xf32>,
    return
  }
  func.func @transform_0(%arg0: i32) -> (i32, i32) {
    %c0_i32 = arith.constant 0 : i32
    %c0_i32_0 = arith.constant 0 : i32
    return %arg0, %c0_i32 : i32, i32
  }
  func.func @transform_1(%arg0: i32) -> (i32, i32) {
    %c0_i32 = arith.constant 0 : i32
    %c0_i32_0 = arith.constant 0 : i32
    %c0_i32_1 = arith.constant 0 : i32
    return %c0_i32, %c0_i32_0 : i32, i32
  }
  func.func @transform_2(%arg0: i32) -> (i32, i32) {
    %c0_i32 = arith.constant 0 : i32
    %c0_i32_0 = arith.constant 0 : i32
    %c0_i32_1 = arith.constant 0 : i32
    return %c0_i32, %c0_i32_0 : i32, i32
  }
  func.func @transform_3(%arg0: i32) -> (i32, i32) {
    %c0_i32 = arith.constant 0 : i32
    %c0_i32_0 = arith.constant 0 : i32
    %c0_i32_1 = arith.constant 0 : i32
    return %c0_i32, %c0_i32_0 : i32, i32
  }
  func.func @transform_4(%arg0: i32) -> (i32, i32) {
    %c0_i32 = arith.constant 0 : i32
    %c0_i32_0 = arith.constant 0 : i32
    %c0_i32_1 = arith.constant 0 : i32
    return %c0_i32, %c0_i32_0 : i32, i32
  }
  func.func @transform_5(%arg0: i32) -> (i32, i32) {
    %c0_i32 = arith.constant 0 : i32
    %c0_i32_0 = arith.constant 0 : i32
    %c0_i32_1 = arith.constant 0 : i32
    return %c0_i32, %c0_i32_0 : i32, i32
  }
  func.func @transform_6(%arg0: i32) -> (i32, i32) {
    %c0_i32 = arith.constant 0 : i32
    %c0_i32_0 = arith.constant 0 : i32
    %c0_i32_1 = arith.constant 0 : i32
    return %c0_i32, %c0_i32_0 : i32, i32
  }
  func.func @transform_7(%arg0: i32) -> (i32, i32) {
    %c0_i32 = arith.constant 0 : i32
    %c0_i32_0 = arith.constant 0 : i32
    return %arg0, %c0_i32 : i32, i32
  }
}

</mosaic_0001>

<bundles_post_ra>
// kernel: tpu_custom_call.1
= control target key start
LH: loop header
LB: loop body
LE: loop exit
PB: predicated region body
PF: predicated region fallthrough
CT: control target
= control target key end

     0   :  { %12 = vsyncpa [#allocation4], 0  ;;  %s464_s0 = inlined_call_operand.hbm [shape: f32[8,128], index: 0, kind: input, shape index: {}]   ;;  %s465_s1 = inlined_call_operand.hbm [shape: f32[128,128], index: 1, kind: input, shape index: {}]   ;;  %s466_s2 = inlined_call_operand.vmem [shape: f32[1,128], index: 2, kind: input, shape index: {}]   ;;  %s467_s3 = inlined_call_operand.hbm [shape: f32[128,128], index: 3, kind: input, shape index: {}]   ;;  %s468_s4 = inlined_call_operand.vmem [shape: f32[1,128], index: 4, kind: input, shape index: {}]   ;;  %s469_s5 = inlined_call_operand.hbm [shape: f32[128,128], index: 5, kind: input, shape index: {}]   ;;  %s470_s6 = inlined_call_operand.vmem [shape: f32[1,128], index: 6, kind: input, shape index: {}]   ;;  %s471_s7 = inlined_call_operand.hbm [shape: f32[8,128], index: 7, kind: output, shape index: {}]  }
   0x1   :  { %13 = vsyncpa [#allocation7], 0 }
   0x2   :  { %14 = vsyncpa [#allocation10], 0  ;;  %s31_s26 = sshll.u32 %s465_s1, 4  ;;  %s32_s26 = int_to_ptr.hbm [resolvable:$true] %s31_s26 }
   0x3   :  { %15 = vsyncpa [#allocation5], 0  ;;  %s393_s27 = smov [#allocation6]   ;;  %s21_s8 = sshll.u32 %s464_s0, 4  ;;  %s22_s8 = int_to_ptr.hbm [resolvable:$true] %s21_s8 }
   0x4   :  { %s33_s28 = sshll.u32 %s393_s27, 4  ;;  %s394_s9 = smov 128   ;;  %s34_s28 = int_to_ptr.vmem [resolvable:$true] %s33_s28 }
   0x5   :  { %s395_s10 = smov 8   ;;  %s396_s11 = smov [#allocation3]  }
   0x6   :  { %39 = dma.hbm_to_vmem [thread:$0]  %s32_s26, 2048, %s34_s28, [#allocation7], %s394_s9, %s394_s9, %s395_s10  }
   0x7   :  { %s23_s12 = sshll.u32 %s396_s11, 4  ;;  %s46_s15 = sshll.u32 %s467_s3, 4  ;;  %s24_s12 = int_to_ptr.vmem [resolvable:$true] %s23_s12  ;;  %s47_s15 = int_to_ptr.hbm [resolvable:$true] %s46_s15 }
   0x8   :  { %26 = dma.hbm_to_vmem [thread:$0]  %s22_s8, 128, %s24_s12, [#allocation4]  }
   0x9   :  { %s61_s17 = sshll.u32 %s469_s5, 4  ;;  %s397_s18 = smov [#allocation8]   ;;  %s62_s17 = int_to_ptr.hbm [resolvable:$true] %s61_s17 }
   0xa   :  { %s48_s19 = sshll.u32 %s397_s18, 4  ;;  %s398_s0 = smov [#allocation9]   ;;  %s49_s19 = int_to_ptr.vmem [resolvable:$true] %s48_s19 }
   0xb   :  { %54 = dma.hbm_to_vmem [thread:$0]  %s47_s15, 2048, %s49_s19, [#allocation7], %s394_s9, %s394_s9, %s395_s10  }
   0xc   :  { %s63_s20 = sshll.u32 %s398_s0, 4  ;;  %s64_s20 = int_to_ptr.vmem [resolvable:$true] %s63_s20 }
   0xd   :  { %69 = dma.hbm_to_vmem [thread:$0]  %s62_s17, 2048, %s64_s20, [#allocation10], %s394_s9, %s394_s9, %s395_s10  }
   0xe   :  { %385 = dma.done.wait [#allocation4], 128  }
   0xf   :  { %386 = vsyncadd [#allocation4], 4294967168 }
  0x10   :  { %387 = dma.done.wait [#allocation7], 4096  }
  0x11   :  { %388 = vsyncadd [#allocation7], 4294963200 }
  0x12   :  { %389 = dma.done.wait [#allocation10], 2048  }
  0x13   :  { %390 = vsyncadd [#allocation10], 4294965248  ;;  %v104_v0 = vld [vmem:[#allocation6 + $0x78] sm:$0xff]  ;;  %v103_v1 = vld [vmem:[#allocation6 + $0x70] sm:$0xff]  ;;  %s399_s24 = smov [#allocation11]   ;;  %s239_s27 = sshll.u32 %s471_s7, 4  ;;  %s240_s27 = int_to_ptr.hbm [resolvable:$true] %s239_s27 }
  0x14   :  { %109 = vmatpush.msra.mxu0 %v104_v0  ;;  %v102_v2 = vld [vmem:[#allocation6 + $0x68] sm:$0xff]  ;;  %v101_v3 = vld [vmem:[#allocation6 + $0x60] sm:$0xff]  ;;  %v155_v4 = vld [vmem:[#allocation8 + $0x78] sm:$0xff]  ;;  %s237_s25 = sshll.u32 %s399_s24, 4  ;;  %s238_s25 = int_to_ptr.vmem [resolvable:$true] %s237_s25 }
  0x15   :  { %v100_v5 = vld [vmem:[#allocation6 + $0x58] sm:$0xff]  ;;  %160 = vmatpush.msra.mxu1 %v155_v4  ;;  %v154_v6 = vld [vmem:[#allocation8 + $0x70] sm:$0xff]  ;;  %v153_v7 = vld [vmem:[#allocation8 + $0x68] sm:$0xff] }
  0x16   :  { %110 = vmatpush.msra.mxu0 %v103_v1  ;;  %v99_v8 = vld [vmem:[#allocation6 + $0x50] sm:$0xff]  ;;  %v152_v9 = vld [vmem:[#allocation8 + $0x60] sm:$0xff]  ;;  %v98_v10 = vld [vmem:[#allocation6 + $0x48] sm:$0xff] }
  0x17   :  { %161 = vmatpush.msra.mxu1 %v154_v6  ;;  %v97_v11 = vld [vmem:[#allocation6 + $0x40] sm:$0xff]  ;;  %v96_v12 = vld [vmem:[#allocation6 + $0x38] sm:$0xff]  ;;  %v95_v13 = vld [vmem:[#allocation6 + $0x30] sm:$0xff] }
  0x18   :  { %111 = vmatpush.msra.mxu0 %v102_v2  ;;  %v94_v14 = vld [vmem:[#allocation6 + $0x28] sm:$0xff]  ;;  %v93_v15 = vld [vmem:[#allocation6 + $0x20] sm:$0xff]  ;;  %v92_v16 = vld [vmem:[#allocation6 + $0x18] sm:$0xff] }
  0x19   :  { %162 = vmatpush.msra.mxu1 %v153_v7  ;;  %v91_v17 = vld [vmem:[#allocation6 + $0x10] sm:$0xff]  ;;  %v90_v18 = vld [vmem:[#allocation6 + $0x8] sm:$0xff]  ;;  %v89_v19 = vld [vmem:[#allocation6] sm:$0xff] }
  0x1a   :  { %112 = vmatpush.msra.mxu0 %v101_v3  ;;  %v88_v20 = vld [vmem:[#allocation3] sm:$0xff]  ;;  %v150_v22 = vld [vmem:[#allocation8 + $0x50] sm:$0xff]  ;;  %v149_v23 = vld [vmem:[#allocation8 + $0x48] sm:$0xff] }
  0x1b   :  { %163 = vmatpush.msra.mxu1 %v152_v9  ;;  %v151_v21 = vld [vmem:[#allocation8 + $0x58] sm:$0xff]  ;;  %v148_v24 = vld [vmem:[#allocation8 + $0x40] sm:$0xff]  ;;  %v146_v26 = vld [vmem:[#allocation8 + $0x30] sm:$0xff] }
  0x1c   :  { %113 = vmatpush.msra.mxu0 %v100_v5  ;;  %v147_v25 = vld [vmem:[#allocation8 + $0x38] sm:$0xff]  ;;  %v145_v27 = vld [vmem:[#allocation8 + $0x28] sm:$0xff]  ;;  %v144_v28 = vld [vmem:[#allocation8 + $0x20] sm:$0xff] }
  0x1d   :  { %164 = vmatpush.msra.mxu1 %v151_v21  ;;  %v143_v29 = vld [vmem:[#allocation8 + $0x18] sm:$0xff]  ;;  %v142_v30 = vld [vmem:[#allocation8 + $0x10] sm:$0xff]  ;;  %v141_v31 = vld [vmem:[#allocation8 + $0x8] sm:$0xff] }
  0x1e   :  { %114 = vmatpush.msra.mxu0 %v99_v8  ;;  %v140_v32 = vld [vmem:[#allocation8] sm:$0xff]  ;;  %v206_v33 = vld [vmem:[#allocation9 + $0x78] sm:$0xff]  ;;  %v205_v34 = vld [vmem:[#allocation9 + $0x70] sm:$0xff] }
  0x1f   :  { %165 = vmatpush.msra.mxu1 %v150_v22  ;;  %211 = vmatpush.msra.mxu2 %v206_v33  ;;  %v204_v35 = vld [vmem:[#allocation9 + $0x68] sm:$0xff]  ;;  %v203_v36 = vld [vmem:[#allocation9 + $0x60] sm:$0xff]  ;;  %v258_v37 = vld [vmem:[%s466_s2] ss:$0 sm:$0xff] }
  0x20   :  { %115 = vmatpush.msra.mxu0 %v98_v10  ;;  %v202_v49 = vld [vmem:[#allocation9 + $0x58] sm:$0xff]  ;;  %v201_v50 = vld [vmem:[#allocation9 + $0x50] sm:$0xff]  ;;  %v200_v51 = vld [vmem:[#allocation9 + $0x48] sm:$0xff] }
  0x21   :  { %166 = vmatpush.msra.mxu1 %v149_v23  ;;  %212 = vmatpush.msra.mxu2 %v205_v34  ;;  %v199_v52 = vld [vmem:[#allocation9 + $0x40] sm:$0xff]  ;;  %v198_v53 = vld [vmem:[#allocation9 + $0x38] sm:$0xff]  ;;  %v197_v54 = vld [vmem:[#allocation9 + $0x30] sm:$0xff] }
  0x22   :  { %116 = vmatpush.msra.mxu0 %v97_v11  ;;  %v196_v55 = vld [vmem:[#allocation9 + $0x28] sm:$0xff]  ;;  %v195_v56 = vld [vmem:[#allocation9 + $0x20] sm:$0xff]  ;;  %v194_v57 = vld [vmem:[#allocation9 + $0x18] sm:$0xff] }
  0x23   :  { %167 = vmatpush.msra.mxu1 %v148_v24  ;;  %213 = vmatpush.msra.mxu2 %v204_v35  ;;  %v193_v58 = vld [vmem:[#allocation9 + $0x10] sm:$0xff]  ;;  %v192_v59 = vld [vmem:[#allocation9 + $0x8] sm:$0xff]  ;;  %v191_v60 = vld [vmem:[#allocation9] sm:$0xff] }
  0x24   :  { %117 = vmatpush.msra.mxu0 %v96_v12  ;;  %v259_v61 = vld [vmem:[%s468_s4] ss:$0 sm:$0xff] }
  0x25   :  { %168 = vmatpush.msra.mxu1 %v147_v25  ;;  %214 = vmatpush.msra.mxu2 %v203_v36  ;;  %v260_v9 = vld [vmem:[%s470_s6] ss:$0 sm:$0xff] }
  0x26   :  { %118 = vmatpush.msra.mxu0 %v95_v13 }
  0x27   :  { %169 = vmatpush.msra.mxu1 %v146_v26  ;;  %215 = vmatpush.msra.mxu2 %v202_v49 }
  0x28   :  { %119 = vmatpush.msra.mxu0 %v94_v14 }
  0x29   :  { %170 = vmatpush.msra.mxu1 %v145_v27  ;;  %216 = vmatpush.msra.mxu2 %v201_v50 }
  0x2a   :  { %120 = vmatpush.msra.mxu0 %v93_v15 }
  0x2b   :  { %171 = vmatpush.msra.mxu1 %v144_v28  ;;  %217 = vmatpush.msra.mxu2 %v200_v51 }
  0x2c   :  { %121 = vmatpush.msra.mxu0 %v92_v16 }
  0x2d   :  { %172 = vmatpush.msra.mxu1 %v143_v29  ;;  %218 = vmatpush.msra.mxu2 %v199_v52 }
  0x2e   :  { %122 = vmatpush.msra.mxu0 %v91_v17 }
  0x2f   :  { %173 = vmatpush.msra.mxu1 %v142_v30  ;;  %219 = vmatpush.msra.mxu2 %v198_v53 }
  0x30   :  { %123 = vmatpush.msra.mxu0 %v90_v18 }
  0x31   :  { %174 = vmatpush.msra.mxu1 %v141_v31  ;;  %220 = vmatpush.msra.mxu2 %v197_v54 }
  0x32   :  { %124 = vmatpush.msra.mxu0 %v89_v19 }
  0x33   :  { %125 = vmatmul.f32.vlgmr.msra.gmra.mxu0 %v88_v20  ;;  %175 = vmatpush.msra.mxu1 %v140_v32 }
  0x34   :  { %221 = vmatpush.msra.mxu2 %v196_v55 }
  0x36   :  { %222 = vmatpush.msra.mxu2 %v195_v56 }
  0x38   :  { %223 = vmatpush.msra.mxu2 %v194_v57 }
  0x3a   :  { %224 = vmatpush.msra.mxu2 %v193_v58 }
  0x3c   :  { %225 = vmatpush.msra.mxu2 %v192_v59 }
  0x3e   :  { %226 = vmatpush.msra.mxu2 %v191_v60 }
  0xb0   :  { %v126_v38 = vpop.f32.mrf.mxu0 }
  0xb1   :  { %v127_v39 = vadd.f32 %v258_v37, %v126_v38 }
  0xb3   :  { %v130_v40 = vmul.f32 0.044715, %v127_v39  ;;  %v129_v46 = vmul.f32 0.5, %v127_v39 }
  0xb5   :  { %v131_v41 = vmul.f32 %v130_v40, %v127_v39 }
  0xb7   :  { %v132_v42 = vmul.f32 %v131_v41, %v127_v39 }
  0xb9   :  { %v133_v43 = vadd.f32 %v132_v42, %v127_v39 }
  0xbb   :  { %v134_v44 = vmul.f32 0.7978846, %v133_v43 }
  0xbd   :  { %261 = vtanh.f32 %v134_v44 }
  0xc3   :  { %v262_v45 = vpop.eup %261 }
  0xc4   :  { %v136_v47 = vadd.f32 1.0, %v262_v45 }
  0xc6   :  { %v137_v48 = vmul.f32 %v136_v47, %v129_v46 }
  0xc8   :  { %176 = vmatmul.f32.vlgmr.msra.gmra.mxu1 %v137_v48 }
 0x145   :  { %v177_v62 = vpop.f32.mrf.mxu1 }
 0x146   :  { %v178_v63 = vadd.f32 %v259_v61, %v177_v62 }
 0x148   :  { %v181_v0 = vmul.f32 0.044715, %v178_v63  ;;  %v180_v6 = vmul.f32 0.5, %v178_v63 }
 0x14a   :  { %v182_v1 = vmul.f32 %v181_v0, %v178_v63 }
 0x14c   :  { %v183_v2 = vmul.f32 %v182_v1, %v178_v63 }
 0x14e   :  { %v184_v3 = vadd.f32 %v183_v2, %v178_v63 }
 0x150   :  { %v185_v4 = vmul.f32 0.7978846, %v184_v3 }
 0x152   :  { %263 = vtanh.f32 %v185_v4 }
 0x158   :  { %v264_v5 = vpop.eup %263 }
 0x159   :  { %v187_v7 = vadd.f32 1.0, %v264_v5 }
 0x15b   :  { %v188_v8 = vmul.f32 %v187_v7, %v180_v6 }
 0x15d   :  { %227 = vmatmul.f32.vlgmr.msra.gmra.mxu2 %v188_v8 }
 0x1e0   :  { %v228_v10 = vpop.f32.mrf.mxu2 }
 0x1e1   :  { %v229_v11 = vadd.f32 %v260_v9, %v228_v10 }
 0x1e3   :  { %231 = vst [vmem:[#allocation11] sm:$0xff] %v229_v11 }
 0x1e4   :  { %242 = dma.vmem_to_hbm [thread:$0]  %s238_s25, 128, %s240_s27, [#allocation5]  }
 0x1e5   :  { %391 = dma.done.wait [#allocation5], 128  }
 0x1e6   :  { %392 = vsyncadd [#allocation5], 4294967168 }
 0x1e7   :  { %247 = vsyncpa [#allocation4], 1 }
 0x1e8   :  { %248 = vsyncpa [#allocation7], 1 }
 0x1e9   :  { %249 = vsyncpa [#allocation10], 1 }
 0x1ea   :  { %250 = vsyncpa [#allocation5], 1 }

// kernel: tpu_custom_call.1
= control target key start
LH: loop header
LB: loop body
LE: loop exit
PB: predicated region body
PF: predicated region fallthrough
CT: control target
= control target key end

     0   :  { %12 = vsyncpa [#allocation4], 0  ;;  %s464_s0 = inlined_call_operand.hbm [shape: f32[8,128], index: 0, kind: input, shape index: {}]   ;;  %s465_s1 = inlined_call_operand.hbm [shape: f32[128,128], index: 1, kind: input, shape index: {}]   ;;  %s466_s2 = inlined_call_operand.vmem [shape: f32[1,128], index: 2, kind: input, shape index: {}]   ;;  %s467_s3 = inlined_call_operand.hbm [shape: f32[128,128], index: 3, kind: input, shape index: {}]   ;;  %s468_s4 = inlined_call_operand.vmem [shape: f32[1,128], index: 4, kind: input, shape index: {}]   ;;  %s469_s5 = inlined_call_operand.hbm [shape: f32[128,128], index: 5, kind: input, shape index: {}]   ;;  %s470_s6 = inlined_call_operand.vmem [shape: f32[1,128], index: 6, kind: input, shape index: {}]   ;;  %s471_s7 = inlined_call_operand.hbm [shape: f32[8,128], index: 7, kind: output, shape index: {}]  }
   0x1   :  { %13 = vsyncpa [#allocation7], 0 }
   0x2   :  { %14 = vsyncpa [#allocation10], 0  ;;  %s31_s26 = sshll.u32 %s465_s1, 4  ;;  %s32_s26 = int_to_ptr.hbm [resolvable:$true] %s31_s26 }
   0x3   :  { %15 = vsyncpa [#allocation5], 0  ;;  %s393_s27 = smov [#allocation6]   ;;  %s21_s8 = sshll.u32 %s464_s0, 4  ;;  %s22_s8 = int_to_ptr.hbm [resolvable:$true] %s21_s8 }
   0x4   :  { %s33_s28 = sshll.u32 %s393_s27, 4  ;;  %s394_s9 = smov 128   ;;  %s34_s28 = int_to_ptr.vmem [resolvable:$true] %s33_s28 }
   0x5   :  { %s395_s10 = smov 8   ;;  %s396_s11 = smov [#allocation3]  }
   0x6   :  { %39 = dma.hbm_to_vmem [thread:$0]  %s32_s26, 2048, %s34_s28, [#allocation7], %s394_s9, %s394_s9, %s395_s10  }
   0x7   :  { %s23_s12 = sshll.u32 %s396_s11, 4  ;;  %s46_s15 = sshll.u32 %s467_s3, 4  ;;  %s24_s12 = int_to_ptr.vmem [resolvable:$true] %s23_s12  ;;  %s47_s15 = int_to_ptr.hbm [resolvable:$true] %s46_s15 }
   0x8   :  { %26 = dma.hbm_to_vmem [thread:$0]  %s22_s8, 128, %s24_s12, [#allocation4]  }
   0x9   :  { %s61_s17 = sshll.u32 %s469_s5, 4  ;;  %s397_s18 = smov [#allocation8]   ;;  %s62_s17 = int_to_ptr.hbm [resolvable:$true] %s61_s17 }
   0xa   :  { %s48_s19 = sshll.u32 %s397_s18, 4  ;;  %s398_s0 = smov [#allocation9]   ;;  %s49_s19 = int_to_ptr.vmem [resolvable:$true] %s48_s19 }
   0xb   :  { %54 = dma.hbm_to_vmem [thread:$0]  %s47_s15, 2048, %s49_s19, [#allocation7], %s394_s9, %s394_s9, %s395_s10  }
   0xc   :  { %s63_s20 = sshll.u32 %s398_s0, 4  ;;  %s64_s20 = int_to_ptr.vmem [resolvable:$true] %s63_s20 }
   0xd   :  { %69 = dma.hbm_to_vmem [thread:$0]  %s62_s17, 2048, %s64_s20, [#allocation10], %s394_s9, %s394_s9, %s395_s10  }
   0xe   :  { %385 = dma.done.wait [#allocation4], 128  }
   0xf   :  { %386 = vsyncadd [#allocation4], 4294967168 }
  0x10   :  { %387 = dma.done.wait [#allocation7], 4096  }
  0x11   :  { %388 = vsyncadd [#allocation7], 4294963200 }
  0x12   :  { %389 = dma.done.wait [#allocation10], 2048  }
  0x13   :  { %390 = vsyncadd [#allocation10], 4294965248  ;;  %v104_v0 = vld [vmem:[#allocation6 + $0x78] sm:$0xff]  ;;  %v103_v1 = vld [vmem:[#allocation6 + $0x70] sm:$0xff]  ;;  %s399_s24 = smov [#allocation11]   ;;  %s239_s27 = sshll.u32 %s471_s7, 4  ;;  %s240_s27 = int_to_ptr.hbm [resolvable:$true] %s239_s27 }
  0x14   :  { %109 = vmatpush.msra.mxu0 %v104_v0  ;;  %v102_v2 = vld [vmem:[#allocation6 + $0x68] sm:$0xff]  ;;  %v101_v3 = vld [vmem:[#allocation6 + $0x60] sm:$0xff]  ;;  %v155_v4 = vld [vmem:[#allocation8 + $0x78] sm:$0xff]  ;;  %s237_s25 = sshll.u32 %s399_s24, 4  ;;  %s238_s25 = int_to_ptr.vmem [resolvable:$true] %s237_s25 }
  0x15   :  { %v100_v5 = vld [vmem:[#allocation6 + $0x58] sm:$0xff]  ;;  %160 = vmatpush.msra.mxu1 %v155_v4  ;;  %v154_v6 = vld [vmem:[#allocation8 + $0x70] sm:$0xff]  ;;  %v153_v7 = vld [vmem:[#allocation8 + $0x68] sm:$0xff] }
  0x16   :  { %110 = vmatpush.msra.mxu0 %v103_v1  ;;  %v99_v8 = vld [vmem:[#allocation6 + $0x50] sm:$0xff]  ;;  %v152_v9 = vld [vmem:[#allocation8 + $0x60] sm:$0xff]  ;;  %v98_v10 = vld [vmem:[#allocation6 + $0x48] sm:$0xff] }
  0x17   :  { %161 = vmatpush.msra.mxu1 %v154_v6  ;;  %v97_v11 = vld [vmem:[#allocation6 + $0x40] sm:$0xff]  ;;  %v96_v12 = vld [vmem:[#allocation6 + $0x38] sm:$0xff]  ;;  %v95_v13 = vld [vmem:[#allocation6 + $0x30] sm:$0xff] }
  0x18   :  { %111 = vmatpush.msra.mxu0 %v102_v2  ;;  %v94_v14 = vld [vmem:[#allocation6 + $0x28] sm:$0xff]  ;;  %v93_v15 = vld [vmem:[#allocation6 + $0x20] sm:$0xff]  ;;  %v92_v16 = vld [vmem:[#allocation6 + $0x18] sm:$0xff] }
  0x19   :  { %162 = vmatpush.msra.mxu1 %v153_v7  ;;  %v91_v17 = vld [vmem:[#allocation6 + $0x10] sm:$0xff]  ;;  %v90_v18 = vld [vmem:[#allocation6 + $0x8] sm:$0xff]  ;;  %v89_v19 = vld [vmem:[#allocation6] sm:$0xff] }
  0x1a   :  { %112 = vmatpush.msra.mxu0 %v101_v3  ;;  %v88_v20 = vld [vmem:[#allocation3] sm:$0xff]  ;;  %v150_v22 = vld [vmem:[#allocation8 + $0x50] sm:$0xff]  ;;  %v149_v23 = vld [vmem:[#allocation8 + $0x48] sm:$0xff] }
  0x1b   :  { %163 = vmatpush.msra.mxu1 %v152_v9  ;;  %v151_v21 = vld [vmem:[#allocation8 + $0x58] sm:$0xff]  ;;  %v148_v24 = vld [vmem:[#allocation8 + $0x40] sm:$0xff]  ;;  %v146_v26 = vld [vmem:[#allocation8 + $0x30] sm:$0xff] }
  0x1c   :  { %113 = vmatpush.msra.mxu0 %v100_v5  ;;  %v147_v25 = vld [vmem:[#allocation8 + $0x38] sm:$0xff]  ;;  %v145_v27 = vld [vmem:[#allocation8 + $0x28] sm:$0xff]  ;;  %v144_v28 = vld [vmem:[#allocation8 + $0x20] sm:$0xff] }
  0x1d   :  { %164 = vmatpush.msra.mxu1 %v151_v21  ;;  %v143_v29 = vld [vmem:[#allocation8 + $0x18] sm:$0xff]  ;;  %v142_v30 = vld [vmem:[#allocation8 + $0x10] sm:$0xff]  ;;  %v141_v31 = vld [vmem:[#allocation8 + $0x8] sm:$0xff] }
  0x1e   :  { %114 = vmatpush.msra.mxu0 %v99_v8  ;;  %v140_v32 = vld [vmem:[#allocation8] sm:$0xff]  ;;  %v206_v33 = vld [vmem:[#allocation9 + $0x78] sm:$0xff]  ;;  %v205_v34 = vld [vmem:[#allocation9 + $0x70] sm:$0xff] }
  0x1f   :  { %165 = vmatpush.msra.mxu1 %v150_v22  ;;  %211 = vmatpush.msra.mxu2 %v206_v33  ;;  %v204_v35 = vld [vmem:[#allocation9 + $0x68] sm:$0xff]  ;;  %v203_v36 = vld [vmem:[#allocation9 + $0x60] sm:$0xff]  ;;  %v258_v37 = vld [vmem:[%s466_s2] ss:$0 sm:$0xff] }
  0x20   :  { %115 = vmatpush.msra.mxu0 %v98_v10  ;;  %v202_v49 = vld [vmem:[#allocation9 + $0x58] sm:$0xff]  ;;  %v201_v50 = vld [vmem:[#allocation9 + $0x50] sm:$0xff]  ;;  %v200_v51 = vld [vmem:[#allocation9 + $0x48] sm:$0xff] }
  0x21   :  { %166 = vmatpush.msra.mxu1 %v149_v23  ;;  %212 = vmatpush.msra.mxu2 %v205_v34  ;;  %v199_v52 = vld [vmem:[#allocation9 + $0x40] sm:$0xff]  ;;  %v198_v53 = vld [vmem:[#allocation9 + $0x38] sm:$0xff]  ;;  %v197_v54 = vld [vmem:[#allocation9 + $0x30] sm:$0xff] }
  0x22   :  { %116 = vmatpush.msra.mxu0 %v97_v11  ;;  %v196_v55 = vld [vmem:[#allocation9 + $0x28] sm:$0xff]  ;;  %v195_v56 = vld [vmem:[#allocation9 + $0x20] sm:$0xff]  ;;  %v194_v57 = vld [vmem:[#allocation9 + $0x18] sm:$0xff] }
  0x23   :  { %167 = vmatpush.msra.mxu1 %v148_v24  ;;  %213 = vmatpush.msra.mxu2 %v204_v35  ;;  %v193_v58 = vld [vmem:[#allocation9 + $0x10] sm:$0xff]  ;;  %v192_v59 = vld [vmem:[#allocation9 + $0x8] sm:$0xff]  ;;  %v191_v60 = vld [vmem:[#allocation9] sm:$0xff] }
  0x24   :  { %117 = vmatpush.msra.mxu0 %v96_v12  ;;  %v259_v61 = vld [vmem:[%s468_s4] ss:$0 sm:$0xff] }
  0x25   :  { %168 = vmatpush.msra.mxu1 %v147_v25  ;;  %214 = vmatpush.msra.mxu2 %v203_v36  ;;  %v260_v9 = vld [vmem:[%s470_s6] ss:$0 sm:$0xff] }
  0x26   :  { %118 = vmatpush.msra.mxu0 %v95_v13 }
  0x27   :  { %169 = vmatpush.msra.mxu1 %v146_v26  ;;  %215 = vmatpush.msra.mxu2 %v202_v49 }
  0x28   :  { %119 = vmatpush.msra.mxu0 %v94_v14 }
  0x29   :  { %170 = vmatpush.msra.mxu1 %v145_v27  ;;  %216 = vmatpush.msra.mxu2 %v201_v50 }
  0x2a   :  { %120 = vmatpush.msra.mxu0 %v93_v15 }
  0x2b   :  { %171 = vmatpush.msra.mxu1 %v144_v28  ;;  %217 = vmatpush.msra.mxu2 %v200_v51 }
  0x2c   :  { %121 = vmatpush.msra.mxu0 %v92_v16 }
  0x2d   :  { %172 = vmatpush.msra.mxu1 %v143_v29  ;;  %218 = vmatpush.msra.mxu2 %v199_v52 }
  0x2e   :  { %122 = vmatpush.msra.mxu0 %v91_v17 }
  0x2f   :  { %173 = vmatpush.msra.mxu1 %v142_v30  ;;  %219 = vmatpush.msra.mxu2 %v198_v53 }
  0x30   :  { %123 = vmatpush.msra.mxu0 %v90_v18 }
  0x31   :  { %174 = vmatpush.msra.mxu1 %v141_v31  ;;  %220 = vmatpush.msra.mxu2 %v197_v54 }
  0x32   :  { %124 = vmatpush.msra.mxu0 %v89_v19 }
  0x33   :  { %125 = vmatmul.f32.vlgmr.msra.gmra.mxu0 %v88_v20  ;;  %175 = vmatpush.msra.mxu1 %v140_v32 }
  0x34   :  { %221 = vmatpush.msra.mxu2 %v196_v55 }
  0x36   :  { %222 = vmatpush.msra.mxu2 %v195_v56 }
  0x38   :  { %223 = vmatpush.msra.mxu2 %v194_v57 }
  0x3a   :  { %224 = vmatpush.msra.mxu2 %v193_v58 }
  0x3c   :  { %225 = vmatpush.msra.mxu2 %v192_v59 }
  0x3e   :  { %226 = vmatpush.msra.mxu2 %v191_v60 }
  0xb0   :  { %v126_v38 = vpop.f32.mrf.mxu0 }
  0xb1   :  { %v127_v39 = vadd.f32 %v258_v37, %v126_v38 }
  0xb3   :  { %v130_v40 = vmul.f32 0.044715, %v127_v39  ;;  %v129_v46 = vmul.f32 0.5, %v127_v39 }
  0xb5   :  { %v131_v41 = vmul.f32 %v130_v40, %v127_v39 }
  0xb7   :  { %v132_v42 = vmul.f32 %v131_v41, %v127_v39 }
  0xb9   :  { %v133_v43 = vadd.f32 %v132_v42, %v127_v39 }
  0xbb   :  { %v134_v44 = vmul.f32 0.7978846, %v133_v43 }
  0xbd   :  { %261 = vtanh.f32 %v134_v44 }
  0xc3   :  { %v262_v45 = vpop.eup %261 }
  0xc4   :  { %v136_v47 = vadd.f32 1.0, %v262_v45 }
  0xc6   :  { %v137_v48 = vmul.f32 %v136_v47, %v129_v46 }
  0xc8   :  { %176 = vmatmul.f32.vlgmr.msra.gmra.mxu1 %v137_v48 }
 0x145   :  { %v177_v62 = vpop.f32.mrf.mxu1 }
 0x146   :  { %v178_v63 = vadd.f32 %v259_v61, %v177_v62 }
 0x148   :  { %v181_v0 = vmul.f32 0.044715, %v178_v63  ;;  %v180_v6 = vmul.f32 0.5, %v178_v63 }
 0x14a   :  { %v182_v1 = vmul.f32 %v181_v0, %v178_v63 }
 0x14c   :  { %v183_v2 = vmul.f32 %v182_v1, %v178_v63 }
 0x14e   :  { %v184_v3 = vadd.f32 %v183_v2, %v178_v63 }
 0x150   :  { %v185_v4 = vmul.f32 0.7978846, %v184_v3 }
 0x152   :  { %263 = vtanh.f32 %v185_v4 }
 0x158   :  { %v264_v5 = vpop.eup %263 }
 0x159   :  { %v187_v7 = vadd.f32 1.0, %v264_v5 }
 0x15b   :  { %v188_v8 = vmul.f32 %v187_v7, %v180_v6 }
 0x15d   :  { %227 = vmatmul.f32.vlgmr.msra.gmra.mxu2 %v188_v8 }
 0x1e0   :  { %v228_v10 = vpop.f32.mrf.mxu2 }
 0x1e1   :  { %v229_v11 = vadd.f32 %v260_v9, %v228_v10 }
 0x1e3   :  { %231 = vst [vmem:[#allocation11] sm:$0xff] %v229_v11 }
 0x1e4   :  { %242 = dma.vmem_to_hbm [thread:$0]  %s238_s25, 128, %s240_s27, [#allocation5]  }
 0x1e5   :  { %391 = dma.done.wait [#allocation5], 128  }
 0x1e6   :  { %392 = vsyncadd [#allocation5], 4294967168 }
 0x1e7   :  { %247 = vsyncpa [#allocation4], 1 }
 0x1e8   :  { %248 = vsyncpa [#allocation7], 1 }
 0x1e9   :  { %249 = vsyncpa [#allocation10], 1 }
 0x1ea   :  { %250 = vsyncpa [#allocation5], 1 }

</bundles_post_ra>
